<compile_context>
chip_gen: v6e
topology: v6e:2x2x1
jax: 0.10.0
libtpu: 0.0.40
codegen_flags: <defaults>
</compile_context>

<pallas_src>
import functools

import jax
import jax.numpy as jnp
from jax.experimental import pallas as pl
from jax.experimental.pallas import tpu as pltpu


def _perceptron_kernel(x_ref, w_ref, b_ref, o_ref, acc_ref, *,
                       activation, training, d_total, tk, ragged_k):
    # x_ref: (TB, TK) VMEM      w_ref: (1, TK) VMEM      b_ref: (1,) SMEM
    # o_ref: (1, 1, TB) VMEM (lane-dense batch tile)
    # acc_ref: (1, TB) f32 VMEM scratch, resident across the K ("arbitrary") axis.
    k = pl.program_id(1)

    @pl.when(k == 0)
    def _():
        acc_ref[...] = jnp.zeros_like(acc_ref)

    x = x_ref[...]
    w = w_ref[...]
    if ragged_k:
        # The last K tile hangs off the end of D: zero the invalid columns so the
        # (unspecified) padded values never reach the accumulator.
        col = jax.lax.broadcasted_iota(jnp.int32, x.shape, 1) + k * tk
        x = jnp.where(col < d_total, x, jnp.zeros_like(x))

    # (1, TK) . (TB, TK), contracting over K -> (1, TB). Batch rows land on the
    # 128-wide lane axis, so the final store is lane-dense/unmasked for TB % 128 == 0.
    acc_ref[...] += jax.lax.dot_general(
        w, x,
        dimension_numbers=(((1,), (1,)), ((), ())),
        preferred_element_type=jnp.float32,
    )

    @pl.when(k == pl.num_programs(1) - 1)
    def _():
        z = acc_ref[...] + b_ref[0]  # scalar bias from SMEM
        if activation == "sigmoid":
            out = jax.nn.sigmoid(z)
        elif activation == "tanh":
            out = jnp.tanh(z)
        else:  # 'step' (unknown activations fall back to step, like the reference)
            if training:
                out = jax.nn.sigmoid(10.0 * z)
            else:
                out = (z >= 0.0).astype(jnp.float32)
        o_ref[...] = out.reshape(o_ref.shape)


def _round_down(x, m):
    return (x // m) * m


def _round_up(x, m):
    return -(-x // m) * m


def _choose_tiles(batch, input_size, itemsize):
    """Bytes-based, generation-aware tile sizing. Returns (TB, TK, vmem_limit)."""
    try:
        vmem_cap = int(pltpu.get_tpu_info().vmem_capacity_bytes)
    except Exception:  # pragma: no cover - fall back to the smallest (v7x) budget
        vmem_cap = 64 * 1024 * 1024
    if vmem_cap >= 100 * 1024 * 1024:      # v5e / v6e: 128 MiB physical VMEM
        per_buf = 20 * 1024 * 1024         # ~20 MiB per x buffer (x2 double-buffered)
        vmem_limit = 64 * 1024 * 1024
    else:                                  # v7x: 64 MiB physical VMEM
        per_buf = 10 * 1024 * 1024
        vmem_limit = 40 * 1024 * 1024

    row_bytes = max(input_size * itemsize, 1)
    rows_fit = per_buf // row_bytes

    if rows_fit >= batch or rows_fit >= 128:
        tk = input_size                    # no K split needed
        if batch <= rows_fit:
            if batch >= 256:
                # >= 2 batch tiles so v7x's two TensorCores both issue DMAs.
                tb = _round_up(pl.cdiv(batch, 2), 128)
            else:
                tb = batch                 # single tile == full batch dim
        else:
            tb = max(128, _round_down(rows_fit, 128))
    else:
        # Very wide inputs: bound per-DMA size with a K ("arbitrary") grid axis
        # and a resident f32 accumulator.
        tb = batch if batch < 128 else 128
        tk = max(128, _round_down(per_buf // (tb * itemsize), 128))
    return tb, tk, vmem_limit


def perceptron_forward(x, weight, bias, *, activation="step", training=False):
    """Forward pass matching Perceptron.forward.

    Args:
      x:      (batch, input_size) float32/bfloat16 (a 1-D input is promoted to batch=1)
      weight: (1, input_size)  (PyTorch nn.Linear weight layout)
      bias:   (1,)
    Returns:
      (batch, 1) float32
    """
    if x.ndim == 1:
        x = x[None, :]
    batch, input_size = x.shape

    # Stream x in its native floating dtype (bf16 halves HBM bytes); no extra
    # wrapper-side cast/copy unless the dtype is unsupported for the MXU path.
    if x.dtype not in (jnp.bfloat16, jnp.float32):
        x = x.astype(jnp.float32)
    w = weight.reshape(1, input_size).astype(x.dtype)   # lane-dense (1, D) weight
    b = bias.reshape(1).astype(jnp.float32)             # SMEM scalar

    tb, tk, vmem_limit = _choose_tiles(batch, input_size, x.dtype.itemsize)
    num_b = pl.cdiv(batch, tb)        # ragged last batch tile: Pallas partial read
    num_k = pl.cdiv(input_size, tk)
    ragged_k = (num_k > 1) and (input_size % tk != 0)

    kernel = functools.partial(
        _perceptron_kernel, activation=activation, training=training,
        d_total=input_size, tk=tk, ragged_k=ragged_k)

    out = pl.pallas_call(
        kernel,
        out_shape=jax.ShapeDtypeStruct((num_b, 1, tb), jnp.float32),
        grid_spec=pltpu.PrefetchScalarGridSpec(
            num_scalar_prefetch=0,
            grid=(num_b, num_k),
            in_specs=[
                pl.BlockSpec((tb, tk), lambda i, k: (i, k)),          # x tile
                pl.BlockSpec((1, tk), lambda i, k: (0, k)),           # weight
                pl.BlockSpec(memory_space=pltpu.MemorySpace.SMEM),    # bias scalar
            ],
            out_specs=pl.BlockSpec((1, 1, tb), lambda i, k: (i, 0, 0)),
            scratch_shapes=[pltpu.VMEM((1, tb), jnp.float32)],        # f32 accumulator
        ),
        compiler_params=pltpu.CompilerParams(
            dimension_semantics=("parallel", "arbitrary"),
            vmem_limit_bytes=vmem_limit,
        ),
    )(x, w, b)

    # (num_b, 1, tb) -> (num_b*tb, 1) -> drop junk rows from the ragged last tile.
    return out.reshape(num_b * tb, 1)[:batch]


if __name__ == "__main__":
    key = jax.random.PRNGKey(0)
    k_x, k_w, k_x2 = jax.random.split(key, 3)

    batch, input_size = 8, 16
    x = jax.random.normal(k_x, (batch, input_size), dtype=jnp.float32)
    # Deterministic, non-trivial weights ("normal" init method: std=0.01, zero bias).
    weight = 0.01 * jax.random.normal(k_w, (1, input_size), dtype=jnp.float32)
    bias = jnp.zeros((1,), dtype=jnp.float32)

    z_ref = x @ weight.T + bias

    # Eval-mode 'step' activation (the module's default inference path).
    out = jax.block_until_ready(
        perceptron_forward(x, weight, bias, activation="step", training=False)
    )
    assert out.shape == (batch, 1)
    assert jnp.array_equal(out, (z_ref >= 0.0).astype(jnp.float32)), (out, z_ref)

    # Training-mode 'step' surrogate: sigmoid(10*z).
    out_tr = jax.block_until_ready(
        perceptron_forward(x, weight, bias, activation="step", training=True)
    )
    assert jnp.allclose(out_tr, jax.nn.sigmoid(10.0 * z_ref), atol=1e-6)

    # Explicit sigmoid / tanh activations.
    out_sig = jax.block_until_ready(
        perceptron_forward(x, weight, bias, activation="sigmoid")
    )
    assert jnp.allclose(out_sig, jax.nn.sigmoid(z_ref), atol=1e-6)
    out_tanh = jax.block_until_ready(
        perceptron_forward(x, weight, bias, activation="tanh")
    )
    assert jnp.allclose(out_tanh, jnp.tanh(z_ref), atol=1e-6)

    # Batch that is not a multiple of 8 (exercises the full-dim / no-pad path).
    batch2 = 10
    x2 = jax.random.normal(k_x2, (batch2, input_size), dtype=jnp.float32)
    out2 = jax.block_until_ready(
        perceptron_forward(x2, weight, bias, activation="step", training=False)
    )
    z2 = x2 @ weight.T + bias
    assert out2.shape == (batch2, 1)
    assert jnp.array_equal(out2, (z2 >= 0.0).astype(jnp.float32))

    print("KERNEL_OK")
</pallas_src>

<mosaic_0001>
module attributes {stable_mosaic.version = 11 : i64} {
  func.func @_perceptron_kernel(%arg0: i32, %arg1: i32, %arg2: memref<8x16xf32, #tpu.memory_space<vmem>>, %arg3: memref<1x16xf32, #tpu.memory_space<vmem>>, %arg4: memref<1xf32, #tpu.memory_space<smem>>, %arg5: memref<1x1x8xf32, #tpu.memory_space<vmem>>, %arg6: memref<1x8xf32, #tpu.memory_space<vmem>>) attributes {dimension_semantics = [#tpu.dimension_semantics<parallel>, #tpu.dimension_semantics<arbitrary>], iteration_bounds = array<i64: 1, 1>, scalar_prefetch = 0 : i64, scratch_operands = 1 : i64, tpu.core_type = #tpu.core_type<tc>, window_params = [{transform_indices = @transform_0, window_bounds = array<i64: 8, 16>}, {transform_indices = @transform_1, window_bounds = array<i64: 1, 16>}, {transform_indices = @transform_2, window_bounds = array<i64: 1>}, {transform_indices = @transform_3, window_bounds = array<i64: 1, 1, 8>}]} {
    %c0_i32 = arith.constant 0 : i32
    %0 = arith.cmpi eq, %arg1, %c0_i32 : i32
    %1 = arith.extui %0 : i1 to i32
    %c0_i32_0 = arith.constant 0 : i32
    %2 = arith.cmpi ne, %1, %c0_i32_0 : i32
    scf.if %2 {
      %cst_10 = arith.constant 0.000000e+00 : f32
      %12 = vector.broadcast %cst_10 : f32 to vector<1x8xf32>
      %c0_11 = arith.constant 0 : index
      %c0_12 = arith.constant 0 : index
      %13 = vector.load %arg6[%c0_11, %c0_12] : memref<1x8xf32, #tpu.memory_space<vmem>>, vector<1x8xf32>
      tpu.vector_store %arg6[%c0_11, %c0_12], %12 {strides = array<i32>} : memref<1x8xf32, #tpu.memory_space<vmem>>, vector<1x8xf32>,
    } else {
    }
    %c0 = arith.constant 0 : index
    %c0_1 = arith.constant 0 : index
    %3 = vector.load %arg2[%c0, %c0_1] : memref<8x16xf32, #tpu.memory_space<vmem>>, vector<8x16xf32>
    %c0_2 = arith.constant 0 : index
    %c0_3 = arith.constant 0 : index
    %4 = vector.load %arg3[%c0_2, %c0_3] : memref<1x16xf32, #tpu.memory_space<vmem>>, vector<1x16xf32>
    %c0_4 = arith.constant 0 : index
    %c0_5 = arith.constant 0 : index
    %5 = vector.load %arg6[%c0_4, %c0_5] : memref<1x8xf32, #tpu.memory_space<vmem>>, vector<1x8xf32>
    %cst = arith.constant dense<0.000000e+00> : vector<1x8xf32>
    %6 = tpu.matmul %4, %3, %cst {dimension_numbers = #tpu.dot_dimension_numbers<[1], [1], [0], [0], [0, 0, 1, 0], [], []>} : vector<1x16xf32>, vector<8x16xf32>, vector<1x8xf32> -> vector<1x8xf32>
    %7 = arith.addf %5, %6 : vector<1x8xf32>
    %c0_6 = arith.constant 0 : index
    %c0_7 = arith.constant 0 : index
    %8 = vector.load %arg6[%c0_6, %c0_7] : memref<1x8xf32, #tpu.memory_space<vmem>>, vector<1x8xf32>
    tpu.vector_store %arg6[%c0_6, %c0_7], %7 {strides = array<i32>} : memref<1x8xf32, #tpu.memory_space<vmem>>, vector<1x8xf32>,
    %c0_i32_8 = arith.constant 0 : i32
    %9 = arith.cmpi eq, %arg1, %c0_i32_8 : i32
    %10 = arith.extui %9 : i1 to i32
    %c0_i32_9 = arith.constant 0 : i32
    %11 = arith.cmpi ne, %10, %c0_i32_9 : i32
    scf.if %11 {
      %c0_10 = arith.constant 0 : index
      %c0_11 = arith.constant 0 : index
      %12 = vector.load %arg6[%c0_10, %c0_11] : memref<1x8xf32, #tpu.memory_space<vmem>>, vector<1x8xf32>
      %c0_12 = arith.constant 0 : index
      %13 = memref.load %arg4[%c0_12] : memref<1xf32, #tpu.memory_space<smem>>
      %14 = vector.broadcast %13 : f32 to vector<1x8xf32>
      %15 = arith.addf %12, %14 : vector<1x8xf32>
      %cst_13 = arith.constant 0.000000e+00 : f32
      %16 = vector.broadcast %cst_13 : f32 to vector<1x8xf32>
      %17 = arith.cmpf oge, %15, %16 : vector<1x8xf32>
      %18 = arith.extui %17 : vector<1x8xi1> to vector<1x8xi32>
      %19 = arith.sitofp %18 : vector<1x8xi32> to vector<1x8xf32>
      %20 = vector.shape_cast %19 : vector<1x8xf32> to vector<1x1x8xf32>
      %c0_14 = arith.constant 0 : index
      %c0_15 = arith.constant 0 : index
      %c0_16 = arith.constant 0 : index
      %21 = vector.load %arg5[%c0_14, %c0_15, %c0_16] : memref<1x1x8xf32, #tpu.memory_space<vmem>>, vector<1x1x8xf32>
      tpu.vector_store %arg5[%c0_14, %c0_15, %c0_16], %20 {strides = array<i32>} : memref<1x1x8xf32, #tpu.memory_space<vmem>>, vector<1x1x8xf32>,
    } else {
    }
    return
  }
  func.func @transform_0(%arg0: i32, %arg1: i32) -> (i32, i32) {
    %c0_i32 = arith.constant 0 : i32
    return %arg0, %arg1 : i32, i32
  }
  func.func @transform_1(%arg0: i32, %arg1: i32) -> (i32, i32) {
    %c0_i32 = arith.constant 0 : i32
    %c0_i32_0 = arith.constant 0 : i32
    return %c0_i32, %arg1 : i32, i32
  }
  func.func @transform_2(%arg0: i32, %arg1: i32) -> i32 {
    %c0_i32 = arith.constant 0 : i32
    %c0_i32_0 = arith.constant 0 : i32
    return %c0_i32 : i32
  }
  func.func @transform_3(%arg0: i32, %arg1: i32) -> (i32, i32, i32) {
    %c0_i32 = arith.constant 0 : i32
    %c0_i32_0 = arith.constant 0 : i32
    %c0_i32_1 = arith.constant 0 : i32
    return %arg0, %c0_i32, %c0_i32_0 : i32, i32, i32
  }
}

</mosaic_0001>

<bundles_post_ra>
// kernel: tpu_custom_call.1
= control target key start
LH: loop header
LB: loop body
LE: loop exit
PB: predicated region body
PF: predicated region fallthrough
CT: control target
= control target key end

     0   :  { %9 = vsyncpa [#allocation5], 0  ;;  %s240_s0 = inlined_call_operand.hbm [shape: f32[8,16], index: 0, kind: input, shape index: {}]   ;;  %s241_s1 = inlined_call_operand.vmem [shape: f32[1,16], index: 1, kind: input, shape index: {}]   ;;  %s242_s2 = inlined_call_operand.<no memory space> [shape: f32[1], index: 2, kind: input, shape index: {}]   ;;  %s243_s3 = inlined_call_operand.hbm [shape: f32[1,1,8], index: 3, kind: output, shape index: {}]  }
   0x1   :  { %10 = vsyncpa [#allocation6], 0  ;;  %s201_s12 = smov [#allocation4]  }
   0x2   :  { %s17_s13 = sshll.u32 %s201_s12, 4  ;;  %s18_s13 = int_to_ptr.vmem [resolvable:$true] %s17_s13 }
   0x3   :  { %s165_s14 = scalar_lea.vmem %s18_s13, 128  ;;  %p170_p1 = scmp.lt.s32.totalorder %s18_s13, %s18_s13 }
   0x4   :  { %p166_p0 = scmp.ne.s32.totalorder %s18_s13, %s165_s14  ;;  %p171_p2 = scmp.lt.s32.totalorder %s165_s14, %s165_s14 }
   0x6   :  { %p172_p3 = por %p171_p2, %p170_p1 }
   0x8   :  { %p173_p4 = pnand %p172_p3, %p166_p0 }
   0xa   :  { %176 = shalt.err (!%p173_p4)
}
   0xb   :  { %20 = dma.hbm_to_vmem [thread:$0]  %s240_s0, 128, %s18_s13, [#allocation5]  }
   0xc   :  { %197 = dma.done.wait [#allocation5], 128  }
   0xd   :  { %198 = vsyncadd [#allocation5], 4294967168  ;;  %vm32_vm0 = vcmask 57344   ;;  %v202_v0 = vmov 0.0   ;;  %vm203_vm1 = vmmov 0   ;;  %vm37_vm2 = vcmask 130048  }
   0xe   :  { %148 = vmatprep.subr.mxu0 %v202_v0  ;;  %150 = vmatprep.mubr.msk.f32.mxu0 %vm203_vm1, %v202_v0  ;;  %33 = vst.msk [vmem:[#allocation2] sm:$0x1] %vm32_vm0, %v202_v0  ;;  %v34_v1 = vld [vmem:[#allocation4] sm:$0xff]  ;;  %v35_v2 = vld [vmem:[%s241_s1] sm:$0x1]  ;;  %v122_v7 = vstv %s242_s2  ;;  %s204_s20 = smov [#allocation7]  }
   0xf   :  { %149 = vmatpush3.xpose.msk.msra.mxu0 %vm37_vm2, %v34_v1  ;;  %s134_s21 = sshll.u32 %s204_s20, 4  ;;  %s135_s21 = int_to_ptr.vmem [resolvable:$true] %s134_s21 }
  0x10   :  { %s177_s1 = scalar_lea.vmem %s135_s21, 16  ;;  %s181_s22 = scalar_lea.vmem %s135_s21, 32 }
  0x11   :  { %p178_p5 = scmp.ne.s32.totalorder %s135_s21, %s177_s1  ;;  %p182_p6 = scmp.lt.s32.totalorder %s135_s21, %s135_s21 }
  0x12   :  { %151 = vmatmul.mubr.msk.f32.vlgmr.msra.gmra.mxu0 %vm37_vm2, %v35_v2  ;;  %p183_p7 = scmp.lt.s32.totalorder %s181_s22, %s177_s1 }
  0x14   :  { %p184_p8 = por %p183_p7, %p182_p6 }
  0x15   :  { %v36_v3 = vld [vmem:[#allocation2] sm:$0x1] }
  0x16   :  { %p185_p9 = pnand %p184_p8, %p178_p5 }
  0xd2   :  { %v110_v4 = vpop.f32.mrf.mxu0 }
  0xd3   :  { %v114_v5 = vadd.f32 %v110_v4, %v36_v3 }
  0xd4   :  { %v152_v6 = vpop.f32.mrf.mxu0 }
  0xd5   :  { %116 = vst.msk [vmem:[#allocation2] sm:$0x1] %vm32_vm0, %v114_v5 }
  0xdc   :  { %v120_v8 = vld [vmem:[#allocation2] sm:$0x1] }
  0xdd   :  { %v123_v9 = vadd.f32 %v122_v7, %v120_v8 }
  0xdf   :  { %vm124_vm3 = vcmp.ge.f32.partialorder %v123_v9, 0.0 }
  0xe0   :  { %v145_v10 = vsel %vm124_vm3, 1.0, %v202_v0 }
  0xe1   :  { %127 = vst.msk [vmem:[#allocation7] sm:$0x1] %vm32_vm0, %v145_v10 }
  0xe2   :  { %188 = shalt.err (!%p185_p9)
}
  0xe3   :  { %137 = dma.vmem_to_hbm [thread:$0]  %s135_s21, 16, %s243_s3, [#allocation6]  }
  0xe4   :  { %199 = dma.done.wait [#allocation6], 16  }
  0xe5   :  { %200 = vsyncadd [#allocation6], 4294967280 }
  0xe6   :  { %141 = vsyncpa [#allocation5], 1 }
  0xe7   :  { %142 = vsyncpa [#allocation6], 1 }

</bundles_post_ra>
